<compile_context>
chip_gen: v7x
topology: tpu7x:2x2x1
jax: 0.10.0
libtpu: 0.0.40
codegen_flags: <defaults>
</compile_context>

<pallas_src>
import jax
import jax.numpy as jnp
from jax.experimental import pallas as pl
from jax.experimental.pallas import tpu as pltpu

EPS = 1e-5  # nn.BatchNorm2d default eps


def _round_up(x, m):
    return (x + m - 1) // m * m


# ---------------------------------------------------------------- kernels ---

def _conv_stats_kernel(p_ref, w_ref, sum_ref, ssq_ref):
    """Pass 1: conv-as-matmul on one M tile; accumulate whole-batch per-channel
    sum / sum-of-squares into resident (1, Cout) f32 outputs (reduction over M tiles)."""
    @pl.when(pl.program_id(0) == 0)
    def _():
        sum_ref[...] = jnp.zeros_like(sum_ref)
        ssq_ref[...] = jnp.zeros_like(ssq_ref)

    y = jnp.dot(p_ref[...], w_ref[...], preferred_element_type=jnp.float32)
    sum_ref[...] += jnp.sum(y, axis=0, keepdims=True)
    ssq_ref[...] += jnp.sum(y * y, axis=0, keepdims=True)


def _conv_apply_kernel(p_ref, w_ref, scale_ref, shift_ref, o_ref):
    """Pass 2: conv-as-matmul + folded BatchNorm (scale/shift) + ReLU, bf16 store."""
    y = jnp.dot(p_ref[...], w_ref[...], preferred_element_type=jnp.float32)
    o_ref[...] = jnp.maximum(y * scale_ref[...] + shift_ref[...], 0.0).astype(o_ref.dtype)


def conv_bn_relu(patches, w, gamma_row, beta_row, *, tm_target=512):
    """patches: (M, K) bf16, w: (K, Cout) bf16, gamma/beta: (1, Cout) f32.
    Returns (M, Cout) bf16 = relu(batchnorm(patches @ w)) with training-mode batch stats."""
    m_real, kdim = patches.shape
    cout = w.shape[1]

    tm = tm_target if m_real > tm_target else _round_up(m_real, 8)
    m_pad = _round_up(m_real, tm)
    if m_pad != m_real:
        # zero rows: contribute 0 to sum/sumsq (we divide by m_real), sliced off at the end
        patches = jnp.pad(patches, ((0, m_pad - m_real), (0, 0)))
    grid = (m_pad // tm,)

    p_spec = pl.BlockSpec((tm, kdim), lambda i: (i, 0))
    w_spec = pl.BlockSpec((kdim, cout), lambda i: (0, 0))
    row_spec = pl.BlockSpec((1, cout), lambda i: (0, 0))

    # ---- pass 1: whole-batch per-channel statistics (reduction over M tiles) ----
    s, ss = pl.pallas_call(
        _conv_stats_kernel,
        out_shape=(jax.ShapeDtypeStruct((1, cout), jnp.float32),
                   jax.ShapeDtypeStruct((1, cout), jnp.float32)),
        grid_spec=pltpu.PrefetchScalarGridSpec(
            num_scalar_prefetch=0, grid=grid,
            in_specs=[p_spec, w_spec],
            out_specs=[row_spec, row_spec]),
        compiler_params=pltpu.CompilerParams(
            dimension_semantics=("arbitrary",),
            vmem_limit_bytes=32 * 1024 * 1024),
    )(patches, w)

    # tiny (Cout,) per-channel math: fold BN into one scale/shift
    mean = s / m_real
    var = ss / m_real - mean * mean          # biased variance (PyTorch training-mode norm)
    scale = gamma_row * jax.lax.rsqrt(var + EPS)
    shift = beta_row - mean * scale

    # ---- pass 2: conv + folded BN + ReLU, M tiles independent -> "parallel" ----
    y = pl.pallas_call(
        _conv_apply_kernel,
        out_shape=jax.ShapeDtypeStruct((m_pad, cout), jnp.bfloat16),
        grid_spec=pltpu.PrefetchScalarGridSpec(
            num_scalar_prefetch=0, grid=grid,
            in_specs=[p_spec, w_spec, row_spec, row_spec],
            out_specs=pl.BlockSpec((tm, cout), lambda i: (i, 0))),
        compiler_params=pltpu.CompilerParams(
            dimension_semantics=("parallel",),
            vmem_limit_bytes=32 * 1024 * 1024),
    )(patches, w, scale, shift)

    return y[:m_real]


def _fc_relu_kernel(x_ref, w_ref, b_ref, o_ref):
    """K-streamed Linear + bias + ReLU; accumulate directly into the resident f32 output."""
    k = pl.program_id(0)

    @pl.when(k == 0)
    def _():
        o_ref[...] = jnp.zeros_like(o_ref)

    o_ref[...] += jnp.dot(x_ref[...], w_ref[...], preferred_element_type=jnp.float32)

    @pl.when(k == pl.num_programs(0) - 1)
    def _():
        o_ref[...] = jnp.maximum(o_ref[...] + b_ref[...], 0.0)


def _pick_block_k(kdim, target_rows=8192):
    """Largest multiple-of-128 divisor of kdim that is <= target_rows.
    For the full-size model (kdim = 508032 = 3969*128) this picks 63*128 = 8064."""
    if kdim <= target_rows:
        return kdim
    for d in range(target_rows // 128, 0, -1):
        bk = d * 128
        if kdim % bk == 0:
            return bk
    return kdim  # no aligned divisor: fall back to a single block


def fc_relu(x, w, bias_row, *, target_rows=8192):
    m, kdim = x.shape
    nout = w.shape[1]
    block_k = _pick_block_k(kdim, target_rows)
    assert kdim % block_k == 0, (kdim, block_k)
    grid = (kdim // block_k,)
    return pl.pallas_call(
        _fc_relu_kernel,
        out_shape=jax.ShapeDtypeStruct((m, nout), jnp.float32),
        grid_spec=pltpu.PrefetchScalarGridSpec(
            num_scalar_prefetch=0, grid=grid,
            in_specs=[
                pl.BlockSpec((m, block_k), lambda k: (0, k)),      # activations: stream K
                pl.BlockSpec((block_k, nout), lambda k: (k, 0)),   # weight: stream K tiles
                pl.BlockSpec((1, nout), lambda k: (0, 0)),         # bias: resident
            ],
            out_specs=pl.BlockSpec((m, nout), lambda k: (0, 0))),  # resident accumulator
        compiler_params=pltpu.CompilerParams(
            dimension_semantics=("arbitrary",),                    # K is a reduction axis
            vmem_limit_bytes=32 * 1024 * 1024),
    )(x, w, bias_row)


# ------------------------------------------------------------------- glue ---

def im2col_nhwc(x, k, s):
    """VALID-conv patch extraction on an NHWC tensor.
    Rows in (n, oh, ow) order, columns in (ki, kj, c) order -- matches conv weights
    laid out as (KH, KW, Cin, Cout).reshape(KH*KW*Cin, Cout)."""
    n, h, w, c = x.shape
    oh = (h - k) // s + 1
    ow = (w - k) // s + 1
    cols = []
    for i in range(k):
        for j in range(k):
            cols.append(x[:, i:i + s * (oh - 1) + 1:s, j:j + s * (ow - 1) + 1:s, :])
    p = jnp.stack(cols, axis=3)                      # (N, OH, OW, k*k, C)
    return p.reshape(n * oh * ow, k * k * c), (n, oh, ow)


def prepare_params(params, oh2, ow2):
    """One-time parameter re-layout (outside the hot path):
       * conv weights OIHW -> (KH*KW*Cin[_pad], Cout_pad) bf16; channels padded only to a
         multiple of 8 (NOT 128) so downstream contraction dims stay small,
       * gamma/beta/bias as (1, C) f32 rows,
       * fc weight permuted from the PyTorch NCHW-flatten order to the NHWC(c2_pad)-flatten
         order emitted by the conv stack; output (latent) dim left unpadded to minimize the
         bytes streamed for the bandwidth-bound FC."""
    c1 = params["conv1_w"].shape[0]
    c2 = params["conv2_w"].shape[0]
    latent = params["fc_w"].shape[0]
    c1p = _round_up(c1, 8)
    c2p = _round_up(c2, 8)

    def pad_row(v, width):
        return jnp.zeros((1, width), jnp.float32).at[0, :v.shape[0]].set(v)

    # conv1: (Cout,Cin,KH,KW) -> (KH,KW,Cin,Cout) -> (27, c1p)
    w1 = params["conv1_w"].transpose(2, 3, 1, 0)
    w1p = jnp.zeros((3, 3, 3, c1p), jnp.float32).at[..., :c1].set(w1).reshape(27, c1p)

    # conv2: its input is the c1p-channel conv1 activation -> pad Cin to c1p only (K = 9*c1p)
    w2 = params["conv2_w"].transpose(2, 3, 1, 0)                               # (3,3,c1,c2)
    w2p = jnp.zeros((3, 3, c1p, c2p), jnp.float32).at[:, :, :c1, :c2].set(w2)
    w2p = w2p.reshape(9 * c1p, c2p)

    # fc: permute columns so the plain NHWC(c2p) reshape-flatten matches torch.flatten(NCHW,1)
    wf = params["fc_w"].reshape(latent, c2, oh2, ow2).transpose(2, 3, 1, 0)    # (oh2,ow2,c2,L)
    wfp = jnp.zeros((oh2, ow2, c2p, latent), jnp.float32).at[:, :, :c2, :].set(wf)
    wfp = wfp.reshape(oh2 * ow2 * c2p, latent)

    return {
        "w1": w1p.astype(jnp.bfloat16),
        "w2": w2p.astype(jnp.bfloat16),
        "wf": wfp.astype(jnp.bfloat16),
        "g1": pad_row(params["bn1_g"], c1p), "b1": pad_row(params["bn1_b"], c1p),
        "g2": pad_row(params["bn2_g"], c2p), "b2": pad_row(params["bn2_b"], c2p),
        "bf": params["fc_b"].reshape(1, latent).astype(jnp.float32),
        "latent": latent, "c1p": c1p, "c2p": c2p,
    }


def image_encoder_forward(x_nchw, prep):
    # single NCHW -> NHWC transpose + bf16 cast at the model boundary; downstream stays
    # NHWC bf16 end-to-end (no extra cast passes, no activation transposes).
    x = jnp.transpose(x_nchw, (0, 2, 3, 1)).astype(jnp.bfloat16)

    # ---- conv1 + bn1 + relu ----
    p1, (n, oh1, ow1) = im2col_nhwc(x, 3, 2)
    y1 = conv_bn_relu(p1, prep["w1"], prep["g1"], prep["b1"])          # (M1, c1p) bf16
    y1 = y1.reshape(n, oh1, ow1, prep["c1p"])                          # free reshape

    # ---- conv2 + bn2 + relu ----
    # TODO(synk): replace this im2col with an in-kernel 9-shifted matmul over a VMEM halo tile.
    p2, (_, oh2, ow2) = im2col_nhwc(y1, 3, 2)
    y2 = conv_bn_relu(p2, prep["w2"], prep["g2"], prep["b2"])          # (M2, c2p) bf16

    # ---- flatten in NHWC(c2p) order; fc weight was permuted to match at prep time ----
    flat = y2.reshape(n, oh2 * ow2 * prep["c2p"])

    # ---- fc + relu (K-streamed, accumulate into resident f32 output) ----
    return fc_relu(flat, prep["wf"], prep["bf"])


# -------------------------------------------------------------- reference ---

def _bn_train(x_nchw, gamma, beta):
    mean = jnp.mean(x_nchw, axis=(0, 2, 3), keepdims=True)
    var = jnp.mean(jnp.square(x_nchw - mean), axis=(0, 2, 3), keepdims=True)
    return gamma[None, :, None, None] * (x_nchw - mean) * jax.lax.rsqrt(var + EPS) \
        + beta[None, :, None, None]


def reference_forward(x, params):
    dn = ("NCHW", "OIHW", "NCHW")
    y = jax.lax.conv_general_dilated(x, params["conv1_w"], (2, 2), "VALID",
                                     dimension_numbers=dn)
    y = jnp.maximum(_bn_train(y, params["bn1_g"], params["bn1_b"]), 0.0)
    y = jax.lax.conv_general_dilated(y, params["conv2_w"], (2, 2), "VALID",
                                     dimension_numbers=dn)
    y = jnp.maximum(_bn_train(y, params["bn2_g"], params["bn2_b"]), 0.0)
    y = y.reshape(y.shape[0], -1)
    return jnp.maximum(y @ params["fc_w"].T + params["fc_b"], 0.0)


# ------------------------------------------------------------------- main ---

if __name__ == "__main__":
    # small, consistent shapes: num_channels c=4, latent_dims=32, input 3x19x19
    #   conv1: (2,3,19,19) -> (2,4,9,9); conv2 -> (2,8,4,4); flatten -> (2,128); fc -> (2,32)
    C, LATENT = 4, 32
    N, H, W = 2, 19, 19
    OH2 = OW2 = 4
    FLAT = (2 * C) * OH2 * OW2      # 128 (stands in for 508032 of the full-size model)

    key = jax.random.PRNGKey(0)
    k1, k2, k3, k4, k5, k6, k7, k8, k9 = jax.random.split(key, 9)
    params = {
        "conv1_w": 0.1 * jax.random.normal(k1, (C, 3, 3, 3), jnp.float32),
        "conv2_w": 0.1 * jax.random.normal(k2, (2 * C, C, 3, 3), jnp.float32),
        "bn1_g": 1.0 + 0.1 * jax.random.normal(k6, (C,), jnp.float32),
        "bn1_b": 0.1 * jax.random.normal(k7, (C,), jnp.float32),
        "bn2_g": 1.0 + 0.1 * jax.random.normal(k8, (2 * C,), jnp.float32),
        "bn2_b": 0.1 * jax.random.normal(k9, (2 * C,), jnp.float32),
        "fc_w": 0.1 * jax.random.normal(k3, (LATENT, FLAT), jnp.float32),
        "fc_b": 0.1 * jax.random.normal(k4, (LATENT,), jnp.float32),
    }
    x = jax.random.normal(k5, (N, 3, H, W), jnp.float32)

    prep = prepare_params(params, oh2=OH2, ow2=OW2)

    out = jax.block_until_ready(image_encoder_forward(x, prep))
    ref = jax.block_until_ready(reference_forward(x, params))

    assert out.shape == (N, LATENT), out.shape
    assert bool(jnp.all(jnp.isfinite(out)))
    # tolerance reflects the bf16 MXU operands / bf16 inter-layer activations (f32 accumulation)
    err = float(jnp.max(jnp.abs(out - ref)))
    assert jnp.allclose(out, ref, atol=8e-2, rtol=8e-2), err

    print("KERNEL_OK")
</pallas_src>

<mosaic_0001>
module attributes {stable_mosaic.version = 11 : i64} {
  func.func @_conv_stats_kernel(%arg0: i32, %arg1: memref<168x27xbf16, #tpu.memory_space<vmem>>, %arg2: memref<27x8xbf16, #tpu.memory_space<vmem>>, %arg3: memref<1x8xf32, #tpu.memory_space<vmem>>, %arg4: memref<1x8xf32, #tpu.memory_space<vmem>>) attributes {dimension_semantics = [#tpu.dimension_semantics<arbitrary>], iteration_bounds = array<i64: 1>, scalar_prefetch = 0 : i64, scratch_operands = 0 : i64, tpu.core_type = #tpu.core_type<tc>, window_params = [{transform_indices = @transform_0, window_bounds = array<i64: 168, 27>}, {pipeline_mode = #tpu.pipeline_mode<synchronous>, transform_indices = @transform_1, window_bounds = array<i64: 27, 8>}, {pipeline_mode = #tpu.pipeline_mode<synchronous>, transform_indices = @transform_2, window_bounds = array<i64: 1, 8>}, {pipeline_mode = #tpu.pipeline_mode<synchronous>, transform_indices = @transform_3, window_bounds = array<i64: 1, 8>}]} {
    %c0_i32 = arith.constant 0 : i32
    %0 = arith.cmpi eq, %arg0, %c0_i32 : i32
    %1 = arith.extui %0 : i1 to i32
    %c0_i32_0 = arith.constant 0 : i32
    %2 = arith.cmpi ne, %1, %c0_i32_0 : i32
    scf.if %2 {
      %cst_14 = arith.constant 0.000000e+00 : f32
      %17 = vector.broadcast %cst_14 : f32 to vector<1x8xf32>
      %c0_15 = arith.constant 0 : index
      %c0_16 = arith.constant 0 : index
      %18 = vector.load %arg3[%c0_15, %c0_16] : memref<1x8xf32, #tpu.memory_space<vmem>>, vector<1x8xf32>
      tpu.vector_store %arg3[%c0_15, %c0_16], %17 {strides = array<i32>} : memref<1x8xf32, #tpu.memory_space<vmem>>, vector<1x8xf32>,
      %cst_17 = arith.constant 0.000000e+00 : f32
      %19 = vector.broadcast %cst_17 : f32 to vector<1x8xf32>
      %c0_18 = arith.constant 0 : index
      %c0_19 = arith.constant 0 : index
      %20 = vector.load %arg4[%c0_18, %c0_19] : memref<1x8xf32, #tpu.memory_space<vmem>>, vector<1x8xf32>
      tpu.vector_store %arg4[%c0_18, %c0_19], %19 {strides = array<i32>} : memref<1x8xf32, #tpu.memory_space<vmem>>, vector<1x8xf32>,
    } else {
    }
    %c0 = arith.constant 0 : index
    %c0_1 = arith.constant 0 : index
    %3 = vector.load %arg1[%c0, %c0_1] : memref<168x27xbf16, #tpu.memory_space<vmem>>, vector<168x27xbf16>
    %c0_2 = arith.constant 0 : index
    %c0_3 = arith.constant 0 : index
    %4 = vector.load %arg2[%c0_2, %c0_3] : memref<27x8xbf16, #tpu.memory_space<vmem>>, vector<27x8xbf16>
    %cst = arith.constant dense<0.000000e+00> : vector<168x8xf32>
    %5 = tpu.matmul %3, %4, %cst {dimension_numbers = #tpu.dot_dimension_numbers<[1], [0], [0], [1], [0, 0, 1, 1], [], []>} : vector<168x27xbf16>, vector<27x8xbf16>, vector<168x8xf32> -> vector<168x8xf32>
    %c0_4 = arith.constant 0 : index
    %c0_5 = arith.constant 0 : index
    %6 = vector.load %arg3[%c0_4, %c0_5] : memref<1x8xf32, #tpu.memory_space<vmem>>, vector<1x8xf32>
    %cst_6 = arith.constant dense<0.000000e+00> : vector<8xf32>
    %7 = vector.multi_reduction <add>, %5, %cst_6 [0] : vector<168x8xf32> to vector<8xf32>
    %8 = vector.shape_cast %7 : vector<8xf32> to vector<1x8xf32>
    %9 = arith.addf %6, %8 : vector<1x8xf32>
    %c0_7 = arith.constant 0 : index
    %c0_8 = arith.constant 0 : index
    %10 = vector.load %arg3[%c0_7, %c0_8] : memref<1x8xf32, #tpu.memory_space<vmem>>, vector<1x8xf32>
    tpu.vector_store %arg3[%c0_7, %c0_8], %9 {strides = array<i32>} : memref<1x8xf32, #tpu.memory_space<vmem>>, vector<1x8xf32>,
    %c0_9 = arith.constant 0 : index
    %c0_10 = arith.constant 0 : index
    %11 = vector.load %arg4[%c0_9, %c0_10] : memref<1x8xf32, #tpu.memory_space<vmem>>, vector<1x8xf32>
    %12 = arith.mulf %5, %5 : vector<168x8xf32>
    %cst_11 = arith.constant dense<0.000000e+00> : vector<8xf32>
    %13 = vector.multi_reduction <add>, %12, %cst_11 [0] : vector<168x8xf32> to vector<8xf32>
    %14 = vector.shape_cast %13 : vector<8xf32> to vector<1x8xf32>
    %15 = arith.addf %11, %14 : vector<1x8xf32>
    %c0_12 = arith.constant 0 : index
    %c0_13 = arith.constant 0 : index
    %16 = vector.load %arg4[%c0_12, %c0_13] : memref<1x8xf32, #tpu.memory_space<vmem>>, vector<1x8xf32>
    tpu.vector_store %arg4[%c0_12, %c0_13], %15 {strides = array<i32>} : memref<1x8xf32, #tpu.memory_space<vmem>>, vector<1x8xf32>,
    return
  }
  func.func @transform_0(%arg0: i32) -> (i32, i32) {
    %c0_i32 = arith.constant 0 : i32
    %c0_i32_0 = arith.constant 0 : i32
    return %arg0, %c0_i32 : i32, i32
  }
  func.func @transform_1(%arg0: i32) -> (i32, i32) {
    %c0_i32 = arith.constant 0 : i32
    %c0_i32_0 = arith.constant 0 : i32
    %c0_i32_1 = arith.constant 0 : i32
    return %c0_i32, %c0_i32_0 : i32, i32
  }
  func.func @transform_2(%arg0: i32) -> (i32, i32) {
    %c0_i32 = arith.constant 0 : i32
    %c0_i32_0 = arith.constant 0 : i32
    %c0_i32_1 = arith.constant 0 : i32
    return %c0_i32, %c0_i32_0 : i32, i32
  }
  func.func @transform_3(%arg0: i32) -> (i32, i32) {
    %c0_i32 = arith.constant 0 : i32
    %c0_i32_0 = arith.constant 0 : i32
    %c0_i32_1 = arith.constant 0 : i32
    return %c0_i32, %c0_i32_0 : i32, i32
  }
}

</mosaic_0001>

<bundles_post_ra>
// kernel: tpu_custom_call.1
= control target key start
LH: loop header
LB: loop body
LE: loop exit
PB: predicated region body
PF: predicated region fallthrough
CT: control target
= control target key end

     0   :  { %9 = vsyncpa [#allocation3], 0  ;;  %v579_v1 = vmov 0.0   ;;  %vm146_vm0 = vcmask 1044480   ;;  %vm147_vm1 = vcmask 1045504   ;;  %v580_v3 = vmov 65535   ;;  %s788_s0 = inlined_call_operand.vmem [shape: bf16[168,27], index: 0, kind: input, shape index: {}]   ;;  %s789_s1 = inlined_call_operand.vmem [shape: bf16[27,8], index: 1, kind: input, shape index: {}]   ;;  %s790_s2 = inlined_call_operand.hbm [shape: f32[1,8], index: 2, kind: output, shape index: {0}]   ;;  %s791_s3 = inlined_call_operand.hbm [shape: f32[1,8], index: 3, kind: output, shape index: {1}]  }
   0x1   :  { %v518_v0 = vld [vmem:[%s789_s1] sm:$0xff]   ;;  %461 = vmatprep.subr.bf16.mxu0 %v579_v1  ;;  %v519_v2 = vld [vmem:[%s789_s1 + $0x8] sm:$0x3f]   ;;  %509 = vmatprep.subr.bf16.mxu1 %v579_v1  ;;  %v148_v4 = vsel %vm146_vm0, 4294967295, %v580_v3  ;;  %vm581_vm2 = vmmov 0   ;;  %vm112_vm3 = vcmask 220160  }
   0x2   :  { %462 = vmatpush3.bf16.msra.mxu0 %v518_v0  ;;  %511 = vmatpush3.bf16.msra.mxu1 %v518_v0  ;;  %v149_v5 = vsel %vm147_vm1, %v148_v4, 0  ;;  %v520_v7 = vld [vmem:[%s788_s0] sm:$0xff]   ;;  %v524_v8 = vld [vmem:[%s788_s0 + $0x30] sm:$0xff]  }
   0x3   :  { %463 = vmatprep.subr.bf16.mxu0 %v579_v1  ;;  %465 = vmatprep.mubr.msk.bf16.mxu0 %vm581_vm2, %v579_v1  ;;  %v151_v6 = vand.u32 %v519_v2, %v149_v5 }
   0x4   :  { %510 = vmatprep.subr.bf16.mxu1 %v579_v1  ;;  %489 = vmatprep.mubr.msk.bf16.mxu1 %vm581_vm2, %v579_v1 }
   0x6   :  { %464 = vmatpush3.bf16.msra.mxu0 %v151_v6  ;;  %512 = vmatpush3.bf16.msra.mxu1 %v151_v6 }
   0x9   :  { %466 = vmatmul.mubr.msk.bf16.vlgmr.msra.gmra.mrb[0].mxu0 %vm112_vm3, %v520_v7  ;;  %490 = vmatmul.mubr.msk.bf16.vlgmr.msra.gmra.mrb[0].mxu1 %vm112_vm3, %v524_v8 }
   0xa   :  { %469 = vmatprep.mubr.msk.bf16.mxu0 %vm581_vm2, %v579_v1  ;;  %493 = vmatprep.mubr.msk.bf16.mxu1 %vm581_vm2, %v579_v1 }
   0xb   :  { %10 = vsyncpa [#allocation5], 0  ;;  %v521_v9 = vld [vmem:[%s788_s0 + $0x8] sm:$0xff]   ;;  %v526_v10 = vld [vmem:[%s788_s0 + $0x38] sm:$0xff]   ;;  %vm20_vm4 = vcmask 57344   ;;  %vm274_vm5 = vcmask 64512  }
   0xc   :  { %v522_v11 = vld [vmem:[%s788_s0 + $0x10] sm:$0xff]   ;;  %v528_v12 = vld [vmem:[%s788_s0 + $0x40] sm:$0xff]   ;;  %v523_v13 = vld [vmem:[%s788_s0 + $0x18] sm:$0xff]   ;;  %21 = vst.msk [vmem:[#allocation2] sm:$0x1] %vm20_vm4, %v579_v1  ;;  %s583_s11 = smov [#allocation4]  }
   0xd   :  { %v529_v14 = vld [vmem:[%s788_s0 + $0x48] sm:$0xff]   ;;  %v525_v15 = vld [vmem:[%s788_s0 + $0x20] sm:$0xff]   ;;  %v530_v16 = vld [vmem:[%s788_s0 + $0x50] ss:$0 sps:$4 sm:$0xff]   ;;  %22 = vst.msk [vmem:[#allocation4] sm:$0x1] %vm20_vm4, %v579_v1 }
   0xe   :  { %v527_v17 = vld [vmem:[%s788_s0 + $0x28] sm:$0xff]   ;;  %s582_s0 = smov [#allocation2]   ;;  %s412_s12 = sshll.u32 %s583_s11, 4  ;;  %s755_s12 = int_to_ptr.vmem [resolvable:$true] %s412_s12 }
   0xf   :  { %s402_s10 = sshll.u32 %s582_s0, 4  ;;  %s403_s10 = int_to_ptr.vmem [resolvable:$true] %s402_s10 }
  0x10   :  { %s531_s13 = scalar_lea.vmem %s403_s10, 16  ;;  %s535_s14 = scalar_lea.vmem %s403_s10, 32 }
  0x11   :  { %470 = vmatmul.mubr.msk.bf16.gmra.mrb[4].mxu0 %vm112_vm3, %v521_v9  ;;  %494 = vmatmul.mubr.msk.bf16.gmra.mrb[4].mxu1 %vm112_vm3, %v526_v10  ;;  %p532_p0 = scmp.ne.s32.totalorder %s403_s10, %s531_s13  ;;  %p536_p1 = scmp.lt.s32.totalorder %s403_s10, %s403_s10 }
  0x12   :  { %473 = vmatprep.mubr.msk.bf16.mxu0 %vm581_vm2, %v579_v1  ;;  %497 = vmatprep.mubr.msk.bf16.mxu1 %vm581_vm2, %v579_v1  ;;  %p537_p2 = scmp.lt.s32.totalorder %s535_s14, %s531_s13 }
  0x14   :  { %p538_p3 = por %p537_p2, %p536_p1 }
  0x16   :  { %p539_p4 = pnand %p538_p3, %p532_p0 }
  0x19   :  { %474 = vmatmul.mubr.msk.bf16.gmra.mrb[8].mxu0 %vm112_vm3, %v522_v11  ;;  %498 = vmatmul.mubr.msk.bf16.gmra.mrb[8].mxu1 %vm112_vm3, %v528_v12 }
  0x1a   :  { %477 = vmatprep.mubr.msk.bf16.mxu0 %vm581_vm2, %v579_v1  ;;  %501 = vmatprep.mubr.msk.bf16.mxu1 %vm581_vm2, %v579_v1 }
  0x21   :  { %478 = vmatmul.mubr.msk.bf16.gmra.mrb[12].mxu0 %vm112_vm3, %v523_v13  ;;  %502 = vmatmul.mubr.msk.bf16.gmra.mrb[12].mxu1 %vm112_vm3, %v529_v14 }
  0x22   :  { %481 = vmatprep.mubr.msk.bf16.mxu0 %vm581_vm2, %v579_v1  ;;  %505 = vmatprep.mubr.msk.bf16.mxu1 %vm581_vm2, %v579_v1 }
  0x29   :  { %482 = vmatmul.mubr.msk.bf16.gmra.mrb[16].mxu0 %vm112_vm3, %v525_v15  ;;  %506 = vmatmul.mubr.msk.bf16.gmra.mrb[16].mxu1 %vm112_vm3, %v530_v16 }
  0x2a   :  { %485 = vmatprep.mubr.msk.bf16.mxu0 %vm581_vm2, %v579_v1 }
  0x31   :  { %486 = vmatmul.mubr.msk.bf16.gmra.mrb[20].mxu0 %vm112_vm3, %v527_v17 }
  0xdc   :  { %v187_v18 = vpop.f32.mrb[0].mxu0  ;;  %v667_v19 = vpop.f32.mrb[0].mxu1 }
  0xdd   :  { %v326_v20 = vmul.f32 %v187_v18, %v187_v18  ;;  %v467_v21 = vpop.f32.mrb[1].mxu0  ;;  %v491_v22 = vpop.f32.mrb[1].mxu1  ;;  %v275_v25 = vsel %vm274_vm5, %v187_v18, 0.0 }
  0xde   :  { %v190_v23 = vpop.f32.mrb[2].mxu0  ;;  %v669_v24 = vpop.f32.mrb[2].mxu1 }
  0xdf   :  { %v276_v26 = vsel %vm274_vm5, %v190_v23, 0.0  ;;  %v327_v27 = vmul.f32 %v190_v23, %v190_v23  ;;  %v468_v28 = vpop.f32.mrb[3].mxu0  ;;  %v492_v29 = vpop.f32.mrb[3].mxu1  ;;  %v347_v31 = vsel %vm274_vm5, %v326_v20, 0.0 }
  0xe0   :  { %v277_v30 = vadd.f32 %v276_v26, %v275_v25 }
  0xe1   :  { %v348_v32 = vsel %vm274_vm5, %v327_v27, 0.0 }
  0xe2   :  { %v349_v33 = vadd.f32 %v348_v32, %v347_v31 }
  0xe4   :  { %v195_v34 = vpop.f32.mrb[4].mxu0  ;;  %v675_v35 = vpop.f32.mrb[4].mxu1 }
  0xe5   :  { %v278_v36 = vsel %vm274_vm5, %v195_v34, 0.0  ;;  %v328_v37 = vmul.f32 %v195_v34, %v195_v34  ;;  %v471_v38 = vpop.f32.mrb[5].mxu0  ;;  %v495_v39 = vpop.f32.mrb[5].mxu1 }
  0xe6   :  { %v279_v40 = vadd.f32 %v278_v36, %v277_v30  ;;  %v198_v41 = vpop.f32.mrb[6].mxu0  ;;  %v678_v42 = vpop.f32.mrb[6].mxu1 }
  0xe7   :  { %v350_v43 = vsel %vm274_vm5, %v328_v37, 0.0  ;;  %v280_v44 = vsel %vm274_vm5, %v198_v41, 0.0  ;;  %v329_v45 = vmul.f32 %v198_v41, %v198_v41  ;;  %v472_v46 = vpop.f32.mrb[7].mxu0  ;;  %v496_v47 = vpop.f32.mrb[7].mxu1 }
  0xe8   :  { %v351_v48 = vadd.f32 %v350_v43, %v349_v33  ;;  %v281_v49 = vadd.f32 %v280_v44, %v279_v40 }
  0xe9   :  { %v352_v50 = vsel %vm274_vm5, %v329_v45, 0.0 }
  0xea   :  { %v353_v51 = vadd.f32 %v352_v50, %v351_v48 }
  0xec   :  { %v203_v52 = vpop.f32.mrb[8].mxu0  ;;  %v683_v53 = vpop.f32.mrb[8].mxu1 }
  0xed   :  { %v282_v54 = vsel %vm274_vm5, %v203_v52, 0.0  ;;  %v330_v55 = vmul.f32 %v203_v52, %v203_v52  ;;  %v475_v56 = vpop.f32.mrb[9].mxu0  ;;  %v499_v57 = vpop.f32.mrb[9].mxu1  ;;  %v338_v52 = vmul.f32 %v667_v19, %v667_v19 }
  0xee   :  { %v283_v58 = vadd.f32 %v282_v54, %v281_v49  ;;  %v206_v59 = vpop.f32.mrb[10].mxu0  ;;  %v686_v60 = vpop.f32.mrb[10].mxu1 }
  0xef   :  { %v354_v61 = vsel %vm274_vm5, %v330_v55, 0.0  ;;  %v284_v62 = vsel %vm274_vm5, %v206_v59, 0.0  ;;  %v331_v63 = vmul.f32 %v206_v59, %v206_v59  ;;  %v476_v0 = vpop.f32.mrb[11].mxu0  ;;  %v500_v1 = vpop.f32.mrb[11].mxu1 }
  0xf0   :  { %v355_v2 = vadd.f32 %v354_v61, %v353_v51  ;;  %v285_v3 = vadd.f32 %v284_v62, %v283_v58  ;;  %v298_v61 = vsel %vm274_vm5, %v667_v19, 0.0  ;;  %v339_v62 = vmul.f32 %v669_v24, %v669_v24 }
  0xf1   :  { %v356_v4 = vsel %vm274_vm5, %v331_v63, 0.0  ;;  %v302_v19 = vsel %vm274_vm5, %v675_v35, 0.0 }
  0xf2   :  { %v357_v5 = vadd.f32 %v356_v4, %v355_v2  ;;  %v370_v2 = vsel %vm274_vm5, %v338_v52, 0.0  ;;  %v340_v4 = vmul.f32 %v675_v35, %v675_v35  ;;  %v306_v35 = vsel %vm274_vm5, %v683_v53, 0.0 }
  0xf4   :  { %v211_v6 = vpop.f32.mrb[12].mxu0  ;;  %v691_v7 = vpop.f32.mrb[12].mxu1 }
  0xf5   :  { %v286_v8 = vsel %vm274_vm5, %v211_v6, 0.0  ;;  %v332_v9 = vmul.f32 %v211_v6, %v211_v6  ;;  %v479_v10 = vpop.f32.mrb[13].mxu0  ;;  %v503_v11 = vpop.f32.mrb[13].mxu1 }
  0xf6   :  { %v287_v12 = vadd.f32 %v286_v8, %v285_v3  ;;  %v214_v13 = vpop.f32.mrb[14].mxu0  ;;  %v694_v14 = vpop.f32.mrb[14].mxu1  ;;  %v300_v3 = vsel %vm274_vm5, %v669_v24, 0.0  ;;  %v372_v8 = vsel %vm274_vm5, %v339_v62, 0.0  ;;  %v304_v24 = vsel %vm274_vm5, %v678_v42, 0.0 }
  0xf7   :  { %v358_v15 = vsel %vm274_vm5, %v332_v9, 0.0  ;;  %v288_v16 = vsel %vm274_vm5, %v214_v13, 0.0  ;;  %v333_v17 = vmul.f32 %v214_v13, %v214_v13  ;;  %v480_v18 = vpop.f32.mrb[15].mxu0  ;;  %v504_v20 = vpop.f32.mrb[15].mxu1  ;;  %v341_v9 = vmul.f32 %v678_v42, %v678_v42 }
  0xf8   :  { %v359_v21 = vadd.f32 %v358_v15, %v357_v5  ;;  %v289_v22 = vadd.f32 %v288_v16, %v287_v12  ;;  %v374_v12 = vsel %vm274_vm5, %v340_v4, 0.0  ;;  %v342_v13 = vmul.f32 %v683_v53, %v683_v53 }
  0xf9   :  { %v360_v23 = vsel %vm274_vm5, %v333_v17, 0.0  ;;  %v376_v17 = vsel %vm274_vm5, %v341_v9, 0.0  ;;  %v343_v18 = vmul.f32 %v686_v60, %v686_v60  ;;  %v308_v42 = vsel %vm274_vm5, %v686_v60, 0.0 }
  0xfa   :  { %v361_v25 = vadd.f32 %v360_v23, %v359_v21  ;;  %v344_v23 = vmul.f32 %v691_v7, %v691_v7  ;;  %v310_v53 = vsel %vm274_vm5, %v691_v7, 0.0 }
  0xfc   :  { %v219_v26 = vpop.f32.mrb[16].mxu0  ;;  %v699_v27 = vpop.f32.mrb[16].mxu1  ;;  %v382_v60 = vsel %vm274_vm5, %v344_v23, 0.0 }
  0xfd   :  { %v290_v28 = vsel %vm274_vm5, %v219_v26, 0.0  ;;  %v334_v29 = vmul.f32 %v219_v26, %v219_v26  ;;  %v483_v30 = vpop.f32.mrb[17].mxu0  ;;  %v507_v31 = vpop.f32.mrb[17].mxu1 }
  0xfe   :  { %v291_v32 = vadd.f32 %v290_v28, %v289_v22  ;;  %v222_v33 = vpop.f32.mrb[18].mxu0  ;;  %v270_v34 = vpop.f32.mrb[18].mxu1  ;;  %v378_v22 = vsel %vm274_vm5, %v342_v13, 0.0  ;;  %v380_v28 = vsel %vm274_vm5, %v343_v18, 0.0  ;;  %v346_v30 = vmul.f32 %v699_v27, %v699_v27 }
  0xff   :  { %v362_v36 = vsel %vm274_vm5, %v334_v29, 0.0  ;;  %v292_v37 = vsel %vm274_vm5, %v222_v33, 0.0  ;;  %v335_v38 = vmul.f32 %v222_v33, %v222_v33  ;;  %v484_v39 = vpop.f32.mrb[19].mxu0  ;;  %v508_v40 = vpop.f32.mrb[19].mxu1  ;;  %v345_v29 = vmul.f32 %v694_v14, %v694_v14 }
 0x100   :  { %v363_v41 = vadd.f32 %v362_v36, %v361_v25  ;;  %v293_v43 = vadd.f32 %v292_v37, %v291_v32  ;;  %v312_v33 = vsel %vm274_vm5, %v694_v14, 0.0  ;;  %v314_v34 = vsel %vm274_vm5, %v699_v27, 0.0 }
 0x101   :  { %v364_v44 = vsel %vm274_vm5, %v335_v38, 0.0  ;;  %v384_v7 = vsel %vm274_vm5, %v345_v29, 0.0  ;;  %v386_v38 = vsel %vm274_vm5, %v346_v30, 0.0 }
 0x102   :  { %v365_v45 = vadd.f32 %v364_v44, %v363_v41 }
 0x104   :  { %v227_v46 = vpop.f32.mrb[20].mxu0 }
 0x105   :  { %v294_v47 = vsel %vm274_vm5, %v227_v46, 0.0  ;;  %v336_v48 = vmul.f32 %v227_v46, %v227_v46  ;;  %v487_v49 = vpop.f32.mrb[21].mxu0 }
 0x106   :  { %v295_v50 = vadd.f32 %v294_v47, %v293_v43  ;;  %v230_v51 = vpop.f32.mrb[22].mxu0 }
 0x107   :  { %v366_v54 = vsel %vm274_vm5, %v336_v48, 0.0  ;;  %v296_v55 = vsel %vm274_vm5, %v230_v51, 0.0  ;;  %v337_v56 = vmul.f32 %v230_v51, %v230_v51  ;;  %v488_v57 = vpop.f32.mrb[23].mxu0  ;;  %v273_v51 = vld [vmem:[#allocation2] sm:$0x1] }
 0x108   :  { %v367_v58 = vadd.f32 %v366_v54, %v365_v45  ;;  %v297_v59 = vadd.f32 %v296_v55, %v295_v50  ;;  %v325_v54 = vld [vmem:[#allocation4] sm:$0x1] }
 0x109   :  { %v368_v63 = vsel %vm274_vm5, %v337_v56, 0.0 }
 0x10a   :  { %v299_v0 = vadd.f32 %v298_v61, %v297_v59  ;;  %v369_v1 = vadd.f32 %v368_v63, %v367_v58 }
 0x10c   :  { %v301_v5 = vadd.f32 %v300_v3, %v299_v0  ;;  %v371_v6 = vadd.f32 %v370_v2, %v369_v1 }
 0x10e   :  { %v373_v10 = vadd.f32 %v372_v8, %v371_v6  ;;  %v303_v11 = vadd.f32 %v302_v19, %v301_v5 }
 0x110   :  { %v305_v15 = vadd.f32 %v304_v24, %v303_v11  ;;  %v375_v16 = vadd.f32 %v374_v12, %v373_v10 }
 0x112   :  { %v307_v20 = vadd.f32 %v306_v35, %v305_v15  ;;  %v377_v21 = vadd.f32 %v376_v17, %v375_v16 }
 0x114   :  { %v309_v25 = vadd.f32 %v308_v42, %v307_v20  ;;  %v379_v26 = vadd.f32 %v378_v22, %v377_v21 }
 0x116   :  { %v381_v31 = vadd.f32 %v380_v28, %v379_v26  ;;  %v311_v32 = vadd.f32 %v310_v53, %v309_v25 }
 0x118   :  { %v383_v36 = vadd.f32 %v382_v60, %v381_v31  ;;  %v313_v37 = vadd.f32 %v312_v33, %v311_v32 }
 0x11a   :  { %v385_v39 = vadd.f32 %v384_v7, %v383_v36  ;;  %v315_v40 = vadd.f32 %v314_v34, %v313_v37 }
 0x11c   :  { %v316_v41 = vrot.slane %v315_v40, 4  ;;  %v387_v43 = vadd.f32 %v386_v38, %v385_v39 }
 0x11e   :  { %v317_v44 = vadd.f32 %v316_v41, %v315_v40  ;;  %v388_v45 = vrot.slane %v387_v43, 4 }
 0x120   :  { %v318_v46 = vrot.slane %v317_v44, 2  ;;  %v389_v47 = vadd.f32 %v388_v45, %v387_v43 }
 0x122   :  { %v319_v48 = vadd.f32 %v318_v46, %v317_v44  ;;  %v390_v49 = vrot.slane %v389_v47, 2 }
 0x124   :  { %v320_v14 = vrot.slane %v319_v48, 1  ;;  %v391_v50 = vadd.f32 %v390_v49, %v389_v47 }
 0x126   :  { %v321_v27 = vadd.f32 %v320_v14, %v319_v48  ;;  %v392_v52 = vrot.slane %v391_v50, 1 }
 0x128   :  { %v322_v55 = vadd.f32 %v321_v27, %v273_v51  ;;  %v393_v56 = vadd.f32 %v392_v52, %v391_v50 }
 0x12a   :  { %324 = vst.msk [vmem:[#allocation2] sm:$0x1] %vm20_vm4, %v322_v55  ;;  %v394_v57 = vadd.f32 %v393_v56, %v325_v54 }
 0x12b   :  { %542 = shalt.err (!%p539_p4)
}
 0x12c   :  { %s543_s17 = scalar_lea.hbm %s790_s2, 16 }
 0x12d   :  { %p544_p5 = scmp.ne.s32.totalorder %s790_s2, %s543_s17  ;;  %p547_p6 = scmp.lt.u32.totalorder %s543_s17, %s790_s2 }
 0x12f   :  { %p549_p7 = pnand %p547_p6, %p544_p5 }
 0x131   :  { %552 = shalt.err (!%p549_p7)
}
 0x132   :  { %405 = dma.vmem_to_hbm [thread:$0]  %s403_s10, 16, %s790_s2, [#allocation3]   ;;  %395 = vst.msk [vmem:[#allocation4] sm:$0x1] %vm20_vm4, %v394_v57 }
 0x133   :  { %s553_s23 = scalar_lea.vmem %s755_s12, 16  ;;  %s557_s24 = scalar_lea.vmem %s755_s12, 32 }
 0x134   :  { %p554_p8 = scmp.ne.s32.totalorder %s755_s12, %s553_s23  ;;  %p558_p9 = scmp.lt.s32.totalorder %s755_s12, %s755_s12 }
 0x135   :  { %p559_p10 = scmp.lt.s32.totalorder %s557_s24, %s553_s23 }
 0x137   :  { %p560_p11 = por %p559_p10, %p558_p9 }
 0x139   :  { %p561_p12 = pnand %p560_p11, %p554_p8 }
 0x13b   :  { %564 = shalt.err (!%p561_p12)
}
 0x13c   :  { %s565_s27 = scalar_lea.hbm %s791_s3, 16 }
 0x13d   :  { %p566_p13 = scmp.ne.s32.totalorder %s791_s3, %s565_s27  ;;  %p569_p0 = scmp.lt.u32.totalorder %s565_s27, %s791_s3 }
 0x13f   :  { %p571_p1 = pnand %p569_p0, %p566_p13 }
 0x141   :  { %574 = shalt.err (!%p571_p1)
}
 0x142   :  { %415 = dma.vmem_to_hbm [thread:$0]  %s755_s12, 16, %s791_s3, [#allocation5]  }
 0x143   :  { %575 = dma.done.wait [#allocation3], 16  }
 0x144   :  { %576 = vsyncadd [#allocation3], 4294967280 }
 0x145   :  { %577 = dma.done.wait [#allocation5], 16  }
 0x146   :  { %578 = vsyncadd [#allocation5], 4294967280 }
 0x147   :  { %422 = vsyncpa [#allocation3], 1 }
 0x148   :  { %423 = vsyncpa [#allocation5], 1 }

</bundles_post_ra>
